<compile_context>
chip_gen: v5e
topology: v5e:2x2
jax: 0.10.0
libtpu: 0.0.40
codegen_flags: <defaults>
</compile_context>

<pallas_src>
import jax
import jax.numpy as jnp
from jax.experimental import pallas as pl
from jax.experimental.pallas import tpu as pltpu

num_factor = 8
layers = [num_factor * 2, 64, 32, 16]   # [16, 64, 32, 16]
E_DIM = layers[0] // 2                  # 8


def _round_up(x, m):
    return (x + m - 1) // m * m


def _ncf_kernel(ue_ref, ie_ref,
                w1t_ref, b1_ref,
                w2t_ref, b2_ref,
                w3t_ref, b3_ref,
                w4p_ref, wcmf_ref, bp_ref,
                out_ref):
    ue = ue_ref[...]          # (16, T): rows [0:8]=MF user, [8:16]=MLP user
    ie = ie_ref[...]          # (16, T): rows [0:8]=MF item, [8:16]=MLP item
    cdt = ue.dtype            # matmul-input dtype (bf16 or f32)

    # ---- GMF branch: elementwise product (VPU, f32 for v5e safety) ----
    mf_v = (ue[:E_DIM].astype(jnp.float32)
            * ie[:E_DIM].astype(jnp.float32))                    # (8, T)

    # ---- MLP branch (feature-major: batch on the MXU lane/N axis) ----
    # Single fused layer-1 matmul on concat([mlp_u; mlp_i]) -> (16, T).
    x = jnp.concatenate([ue[E_DIM:], ie[E_DIM:]], axis=0)        # (16, T)
    h1 = (jnp.dot(w1t_ref[...], x, preferred_element_type=jnp.float32)
          + b1_ref[...])                                          # (64, T)
    h1 = jnp.maximum(h1, 0.0)

    h2 = (jnp.dot(w2t_ref[...], h1.astype(cdt),
                  preferred_element_type=jnp.float32)
          + b2_ref[...])                                          # (32, T)
    h2 = jnp.maximum(h2, 0.0)

    h3 = (jnp.dot(w3t_ref[...], h2.astype(cdt),
                  preferred_element_type=jnp.float32)
          + b3_ref[...])                                          # (16, T)
    h3 = jnp.maximum(h3, 0.0)

    # ---- Combine layer folded into the last MLP layer ----
    # logit = Wc_mf^T @ mf_v + (W4 @ Wc_mlp)^T @ h3 + (b4 @ Wc_mlp + bc)
    # N=1 matmuls done as broadcast-mul + sublane reduction (VPU/XLU, not MXU).
    logit = (jnp.sum(mf_v * wcmf_ref[...], axis=0, keepdims=True)
             + jnp.sum(h3 * w4p_ref[...], axis=0, keepdims=True)
             + bp_ref[0, 0])                                      # (1, T)
    out_ref[...] = jax.nn.sigmoid(logit)


def init_params(key, num_user, num_item, dtype=jnp.float32):
    """PyTorch-layout parameters. Linear weights stored as (in, out)."""
    keys = jax.random.split(key, 16)
    k = iter(keys)

    def unif(rk, shape, bound):
        return jax.random.uniform(rk, shape, jnp.float32, -bound, bound)

    p = {}
    p["MF_user_e"] = jax.random.normal(next(k), (num_user, E_DIM), jnp.float32)
    p["MF_item_e"] = jax.random.normal(next(k), (num_item, E_DIM), jnp.float32)
    p["MLP_user_e"] = jax.random.normal(next(k), (num_user, E_DIM), jnp.float32)
    p["MLP_item_e"] = jax.random.normal(next(k), (num_item, E_DIM), jnp.float32)

    dims = [(layers[0], layers[1]), (layers[1], layers[2]),
            (layers[2], layers[3]), (layers[3], E_DIM)]
    for idx, (din, dout) in enumerate(dims, start=1):
        bound = 1.0 / float(jnp.sqrt(jnp.float32(din)))
        p[f"W{idx}"] = unif(next(k), (din, dout), bound)
        p[f"b{idx}"] = unif(next(k), (1, dout), bound)

    bound = 1.0 / float(jnp.sqrt(jnp.float32(layers[0])))
    p["Wc"] = unif(next(k), (layers[0], 1), bound)
    p["bc"] = unif(next(k), (1, 1), bound)
    return {name: v.astype(dtype) for name, v in p.items()}


def prepare_kernel_params(params):
    """One-time prep: pack+transpose tables, transpose weights (feature-major),
    fold the combine layer into layer 4."""
    f32 = jnp.float32

    # Packed, pre-transposed tables: (16, num_rows), rows = [MF(8) | MLP(8)].
    user_e_t = jnp.concatenate(
        [params["MF_user_e"], params["MLP_user_e"]], axis=1).T
    item_e_t = jnp.concatenate(
        [params["MF_item_e"], params["MLP_item_e"]], axis=1).T

    W4 = params["W4"].astype(f32)                    # (16, 8)
    Wc = params["Wc"].astype(f32)                    # (16, 1)
    wc_mf, wc_mlp = Wc[:E_DIM], Wc[E_DIM:]           # (8, 1) each
    w4p = W4 @ wc_mlp                                # (16, 1)
    bprime = (params["b4"].astype(f32) @ wc_mlp
              + params["bc"].astype(f32)).reshape(1, 1)

    return dict(
        user_e_t=user_e_t, item_e_t=item_e_t,
        W1t=params["W1"].T, b1=params["b1"].astype(f32).T,   # (64,16), (64,1)
        W2t=params["W2"].T, b2=params["b2"].astype(f32).T,   # (32,64), (32,1)
        W3t=params["W3"].T, b3=params["b3"].astype(f32).T,   # (16,32), (16,1)
        w4p=w4p, wc_mf=wc_mf, bprime=bprime,                  # (16,1),(8,1),(1,1)
    )


def neural_cf_forward(inputs, kparams, *, tile_b=4096):
    """inputs: (B, 2) integer array of (user_id, item_id)."""
    inputs = inputs.astype(jnp.int32)
    users, items = inputs[:, 0], inputs[:, 1]
    B = inputs.shape[0]

    # Lane-dense tiling: tile_b multiple of 128.
    tile_b = min(_round_up(tile_b, 128), _round_up(B, 128))
    Bp = _round_up(B, tile_b)
    if Bp // tile_b == 1 and tile_b % 256 == 0:
        tile_b //= 2   # >= 2 grid steps so both v7x TensorCores get work

    if Bp != B:
        # Pad only the cheap int32 index arrays (index 0 is a valid row);
        # padded lanes compute sigmoid(b') and are sliced off below.
        users = jnp.pad(users, (0, Bp - B))
        items = jnp.pad(items, (0, Bp - B))

    # Feature-major gather straight from the pre-transposed packed tables:
    # result is (16, Bp) with the batch on the lane dimension.
    # TODO(synk): for tables that fit VMEM, move this gather in-kernel
    # (VMEM-resident tables + jnp.take, or PrefetchScalarGridSpec DMA row
    # gather for big tables) to drop the HBM round-trip of the activations.
    ue = jnp.take(kparams["user_e_t"], users, axis=1)   # (16, Bp)
    ie = jnp.take(kparams["item_e_t"], items, axis=1)   # (16, Bp)

    grid = (Bp // tile_b,)
    emb_spec = pl.BlockSpec((2 * E_DIM, tile_b), lambda i: (0, i))

    def const_spec(arr):   # weight resident across all grid steps (same block)
        return pl.BlockSpec(arr.shape, lambda i: (0, 0))

    operands = (ue, ie,
                kparams["W1t"], kparams["b1"],
                kparams["W2t"], kparams["b2"],
                kparams["W3t"], kparams["b3"],
                kparams["w4p"], kparams["wc_mf"], kparams["bprime"])

    in_specs = ([emb_spec, emb_spec]
                + [const_spec(a) for a in operands[2:-1]]
                + [pl.BlockSpec(memory_space=pltpu.MemorySpace.SMEM)])

    out = pl.pallas_call(
        _ncf_kernel,
        out_shape=jax.ShapeDtypeStruct((1, Bp), jnp.float32),
        grid=grid,
        in_specs=in_specs,
        out_specs=pl.BlockSpec((1, tile_b), lambda i: (0, i)),
        compiler_params=pltpu.CompilerParams(
            dimension_semantics=("parallel",)),
    )(*operands)
    return out[0, :B].reshape(B, 1)


def reference_forward(inputs, params):
    """Pure-JAX f32 reference mirroring the PyTorch forward."""
    f32 = jnp.float32
    inputs = inputs.astype(jnp.int32)
    mf_u = params["MF_user_e"][inputs[:, 0]].astype(f32)
    mf_i = params["MF_item_e"][inputs[:, 1]].astype(f32)
    mlp_u = params["MLP_user_e"][inputs[:, 0]].astype(f32)
    mlp_i = params["MLP_item_e"][inputs[:, 1]].astype(f32)
    mf_v = mf_u * mf_i
    x = jnp.concatenate([mlp_u, mlp_i], axis=-1)
    h = jnp.maximum(x @ params["W1"].astype(f32) + params["b1"].astype(f32), 0.0)
    h = jnp.maximum(h @ params["W2"].astype(f32) + params["b2"].astype(f32), 0.0)
    h = jnp.maximum(h @ params["W3"].astype(f32) + params["b3"].astype(f32), 0.0)
    mlp_v = h @ params["W4"].astype(f32) + params["b4"].astype(f32)
    v = jnp.concatenate([mf_v, mlp_v], axis=-1)
    return jax.nn.sigmoid(v @ params["Wc"].astype(f32) + params["bc"].astype(f32))


if __name__ == "__main__":
    key = jax.random.PRNGKey(0)
    k_param, k_u, k_i = jax.random.split(key, 3)

    num_user, num_item = 32, 48
    batch = 8

    users = jax.random.randint(k_u, (batch,), 0, num_user, dtype=jnp.int32)
    items = jax.random.randint(k_i, (batch,), 0, num_item, dtype=jnp.int32)
    inputs = jnp.stack([users, items], axis=1)                    # (B, 2)

    # 1) f32 parameters: must match the reference tightly.
    params_f32 = init_params(k_param, num_user, num_item, dtype=jnp.float32)
    kparams_f32 = prepare_kernel_params(params_f32)
    out_f32 = jax.block_until_ready(neural_cf_forward(inputs, kparams_f32))
    ref_f32 = jax.block_until_ready(reference_forward(inputs, params_f32))
    assert out_f32.shape == (batch, 1)
    assert jnp.allclose(out_f32, ref_f32, atol=1e-5, rtol=1e-5), (out_f32, ref_f32)

    # 2) bf16 parameter storage (the memory-bound recommendation): bf16 matmul
    #    inputs, f32 accumulation / elementwise. Loose tolerance vs bf16 ref.
    params_bf16 = init_params(k_param, num_user, num_item, dtype=jnp.bfloat16)
    kparams_bf16 = prepare_kernel_params(params_bf16)
    out_bf16 = jax.block_until_ready(neural_cf_forward(inputs, kparams_bf16))
    ref_bf16 = jax.block_until_ready(reference_forward(inputs, params_bf16))
    assert out_bf16.shape == (batch, 1)
    assert jnp.allclose(out_bf16, ref_bf16, atol=2e-2, rtol=2e-2), (out_bf16, ref_bf16)

    print("KERNEL_OK")
</pallas_src>

<mosaic_0001>
module attributes {stable_mosaic.version = 11 : i64} {
  func.func @_ncf_kernel(%arg0: i32, %arg1: memref<16x128xf32, #tpu.memory_space<vmem>>, %arg2: memref<16x128xf32, #tpu.memory_space<vmem>>, %arg3: memref<64x16xf32, #tpu.memory_space<vmem>>, %arg4: memref<64x1xf32, #tpu.memory_space<vmem>>, %arg5: memref<32x64xf32, #tpu.memory_space<vmem>>, %arg6: memref<32x1xf32, #tpu.memory_space<vmem>>, %arg7: memref<16x32xf32, #tpu.memory_space<vmem>>, %arg8: memref<16x1xf32, #tpu.memory_space<vmem>>, %arg9: memref<16x1xf32, #tpu.memory_space<vmem>>, %arg10: memref<8x1xf32, #tpu.memory_space<vmem>>, %arg11: memref<1x1xf32, #tpu.memory_space<smem>>, %arg12: memref<1x128xf32, #tpu.memory_space<vmem>>) attributes {dimension_semantics = [#tpu.dimension_semantics<parallel>], iteration_bounds = array<i64: 1>, scalar_prefetch = 0 : i64, scratch_operands = 0 : i64, tpu.core_type = #tpu.core_type<tc>, window_params = [{transform_indices = @transform_0, window_bounds = array<i64: 16, 128>}, {transform_indices = @transform_1, window_bounds = array<i64: 16, 128>}, {pipeline_mode = #tpu.pipeline_mode<synchronous>, transform_indices = @transform_2, window_bounds = array<i64: 64, 16>}, {pipeline_mode = #tpu.pipeline_mode<synchronous>, transform_indices = @transform_3, window_bounds = array<i64: 64, 1>}, {pipeline_mode = #tpu.pipeline_mode<synchronous>, transform_indices = @transform_4, window_bounds = array<i64: 32, 64>}, {pipeline_mode = #tpu.pipeline_mode<synchronous>, transform_indices = @transform_5, window_bounds = array<i64: 32, 1>}, {pipeline_mode = #tpu.pipeline_mode<synchronous>, transform_indices = @transform_6, window_bounds = array<i64: 16, 32>}, {pipeline_mode = #tpu.pipeline_mode<synchronous>, transform_indices = @transform_7, window_bounds = array<i64: 16, 1>}, {pipeline_mode = #tpu.pipeline_mode<synchronous>, transform_indices = @transform_8, window_bounds = array<i64: 16, 1>}, {pipeline_mode = #tpu.pipeline_mode<synchronous>, transform_indices = @transform_9, window_bounds = array<i64: 8, 1>}, {transform_indices = @transform_10, window_bounds = array<i64: 1, 1>}, {transform_indices = @transform_11, window_bounds = array<i64: 1, 128>}]} {
    %c0 = arith.constant 0 : index
    %c0_0 = arith.constant 0 : index
    %0 = vector.load %arg1[%c0, %c0_0] : memref<16x128xf32, #tpu.memory_space<vmem>>, vector<16x128xf32>
    %c0_1 = arith.constant 0 : index
    %c0_2 = arith.constant 0 : index
    %1 = vector.load %arg2[%c0_1, %c0_2] : memref<16x128xf32, #tpu.memory_space<vmem>>, vector<16x128xf32>
    %2 = vector.extract_strided_slice %0 {offsets = [0, 0], sizes = [8, 128], strides = [1, 1]} : vector<16x128xf32> to vector<8x128xf32>
    %3 = vector.extract_strided_slice %1 {offsets = [0, 0], sizes = [8, 128], strides = [1, 1]} : vector<16x128xf32> to vector<8x128xf32>
    %4 = arith.mulf %2, %3 : vector<8x128xf32>
    %5 = vector.extract_strided_slice %0 {offsets = [8, 0], sizes = [8, 128], strides = [1, 1]} : vector<16x128xf32> to vector<8x128xf32>
    %6 = vector.extract_strided_slice %1 {offsets = [8, 0], sizes = [8, 128], strides = [1, 1]} : vector<16x128xf32> to vector<8x128xf32>
    %7 = tpu.concatenate %5, %6 in 0 : vector<8x128xf32>, vector<8x128xf32> -> vector<16x128xf32>
    %c0_3 = arith.constant 0 : index
    %c0_4 = arith.constant 0 : index
    %8 = vector.load %arg3[%c0_3, %c0_4] : memref<64x16xf32, #tpu.memory_space<vmem>>, vector<64x16xf32>
    %cst = arith.constant dense<0.000000e+00> : vector<64x128xf32>
    %9 = tpu.matmul %8, %7, %cst {dimension_numbers = #tpu.dot_dimension_numbers<[1], [0], [0], [1], [0, 0, 1, 1], [], []>} : vector<64x16xf32>, vector<16x128xf32>, vector<64x128xf32> -> vector<64x128xf32>
    %c0_5 = arith.constant 0 : index
    %c0_6 = arith.constant 0 : index
    %10 = vector.load %arg4[%c0_5, %c0_6] : memref<64x1xf32, #tpu.memory_space<vmem>>, vector<64x1xf32>
    %11 = vector.broadcast %10 : vector<64x1xf32> to vector<64x128xf32>
    %12 = arith.addf %9, %11 : vector<64x128xf32>
    %cst_7 = arith.constant 0.000000e+00 : f32
    %13 = vector.broadcast %cst_7 : f32 to vector<64x128xf32>
    %14 = arith.maximumf %12, %13 : vector<64x128xf32>
    %c0_8 = arith.constant 0 : index
    %c0_9 = arith.constant 0 : index
    %15 = vector.load %arg5[%c0_8, %c0_9] : memref<32x64xf32, #tpu.memory_space<vmem>>, vector<32x64xf32>
    %cst_10 = arith.constant dense<0.000000e+00> : vector<32x128xf32>
    %16 = tpu.matmul %15, %14, %cst_10 {dimension_numbers = #tpu.dot_dimension_numbers<[1], [0], [0], [1], [0, 0, 1, 1], [], []>} : vector<32x64xf32>, vector<64x128xf32>, vector<32x128xf32> -> vector<32x128xf32>
    %c0_11 = arith.constant 0 : index
    %c0_12 = arith.constant 0 : index
    %17 = vector.load %arg6[%c0_11, %c0_12] : memref<32x1xf32, #tpu.memory_space<vmem>>, vector<32x1xf32>
    %18 = vector.broadcast %17 : vector<32x1xf32> to vector<32x128xf32>
    %19 = arith.addf %16, %18 : vector<32x128xf32>
    %cst_13 = arith.constant 0.000000e+00 : f32
    %20 = vector.broadcast %cst_13 : f32 to vector<32x128xf32>
    %21 = arith.maximumf %19, %20 : vector<32x128xf32>
    %c0_14 = arith.constant 0 : index
    %c0_15 = arith.constant 0 : index
    %22 = vector.load %arg7[%c0_14, %c0_15] : memref<16x32xf32, #tpu.memory_space<vmem>>, vector<16x32xf32>
    %cst_16 = arith.constant dense<0.000000e+00> : vector<16x128xf32>
    %23 = tpu.matmul %22, %21, %cst_16 {dimension_numbers = #tpu.dot_dimension_numbers<[1], [0], [0], [1], [0, 0, 1, 1], [], []>} : vector<16x32xf32>, vector<32x128xf32>, vector<16x128xf32> -> vector<16x128xf32>
    %c0_17 = arith.constant 0 : index
    %c0_18 = arith.constant 0 : index
    %24 = vector.load %arg8[%c0_17, %c0_18] : memref<16x1xf32, #tpu.memory_space<vmem>>, vector<16x1xf32>
    %25 = vector.broadcast %24 : vector<16x1xf32> to vector<16x128xf32>
    %26 = arith.addf %23, %25 : vector<16x128xf32>
    %cst_19 = arith.constant 0.000000e+00 : f32
    %27 = vector.broadcast %cst_19 : f32 to vector<16x128xf32>
    %28 = arith.maximumf %26, %27 : vector<16x128xf32>
    %c0_20 = arith.constant 0 : index
    %c0_21 = arith.constant 0 : index
    %29 = vector.load %arg10[%c0_20, %c0_21] : memref<8x1xf32, #tpu.memory_space<vmem>>, vector<8x1xf32>
    %30 = vector.broadcast %29 : vector<8x1xf32> to vector<8x128xf32>
    %31 = arith.mulf %4, %30 : vector<8x128xf32>
    %cst_22 = arith.constant dense<0.000000e+00> : vector<128xf32>
    %32 = vector.multi_reduction <add>, %31, %cst_22 [0] : vector<8x128xf32> to vector<128xf32>
    %33 = vector.shape_cast %32 : vector<128xf32> to vector<1x128xf32>
    %c0_23 = arith.constant 0 : index
    %c0_24 = arith.constant 0 : index
    %34 = vector.load %arg9[%c0_23, %c0_24] : memref<16x1xf32, #tpu.memory_space<vmem>>, vector<16x1xf32>
    %35 = vector.broadcast %34 : vector<16x1xf32> to vector<16x128xf32>
    %36 = arith.mulf %28, %35 : vector<16x128xf32>
    %cst_25 = arith.constant dense<0.000000e+00> : vector<128xf32>
    %37 = vector.multi_reduction <add>, %36, %cst_25 [0] : vector<16x128xf32> to vector<128xf32>
    %38 = vector.shape_cast %37 : vector<128xf32> to vector<1x128xf32>
    %39 = arith.addf %33, %38 : vector<1x128xf32>
    %c0_26 = arith.constant 0 : index
    %c0_27 = arith.constant 0 : index
    %40 = memref.load %arg11[%c0_26, %c0_27] : memref<1x1xf32, #tpu.memory_space<smem>>
    %41 = vector.broadcast %40 : f32 to vector<1x128xf32>
    %42 = arith.addf %39, %41 : vector<1x128xf32>
    %43 = arith.negf %42 : vector<1x128xf32>
    %44 = math.exp %43 : vector<1x128xf32>
    %cst_28 = arith.constant 1.000000e+00 : f32
    %45 = vector.broadcast %cst_28 : f32 to vector<1x128xf32>
    %46 = arith.addf %45, %44 : vector<1x128xf32>
    %47 = arith.divf %45, %46 : vector<1x128xf32>
    %c0_29 = arith.constant 0 : index
    %c0_30 = arith.constant 0 : index
    %48 = vector.load %arg12[%c0_29, %c0_30] : memref<1x128xf32, #tpu.memory_space<vmem>>, vector<1x128xf32>
    tpu.vector_store %arg12[%c0_29, %c0_30], %47 {strides = array<i32>} : memref<1x128xf32, #tpu.memory_space<vmem>>, vector<1x128xf32>,
    return
  }
  func.func @transform_0(%arg0: i32) -> (i32, i32) {
    %c0_i32 = arith.constant 0 : i32
    %c0_i32_0 = arith.constant 0 : i32
    return %c0_i32, %arg0 : i32, i32
  }
  func.func @transform_1(%arg0: i32) -> (i32, i32) {
    %c0_i32 = arith.constant 0 : i32
    %c0_i32_0 = arith.constant 0 : i32
    return %c0_i32, %arg0 : i32, i32
  }
  func.func @transform_2(%arg0: i32) -> (i32, i32) {
    %c0_i32 = arith.constant 0 : i32
    %c0_i32_0 = arith.constant 0 : i32
    %c0_i32_1 = arith.constant 0 : i32
    return %c0_i32, %c0_i32_0 : i32, i32
  }
  func.func @transform_3(%arg0: i32) -> (i32, i32) {
    %c0_i32 = arith.constant 0 : i32
    %c0_i32_0 = arith.constant 0 : i32
    %c0_i32_1 = arith.constant 0 : i32
    return %c0_i32, %c0_i32_0 : i32, i32
  }
  func.func @transform_4(%arg0: i32) -> (i32, i32) {
    %c0_i32 = arith.constant 0 : i32
    %c0_i32_0 = arith.constant 0 : i32
    %c0_i32_1 = arith.constant 0 : i32
    return %c0_i32, %c0_i32_0 : i32, i32
  }
  func.func @transform_5(%arg0: i32) -> (i32, i32) {
    %c0_i32 = arith.constant 0 : i32
    %c0_i32_0 = arith.constant 0 : i32
    %c0_i32_1 = arith.constant 0 : i32
    return %c0_i32, %c0_i32_0 : i32, i32
  }
  func.func @transform_6(%arg0: i32) -> (i32, i32) {
    %c0_i32 = arith.constant 0 : i32
    %c0_i32_0 = arith.constant 0 : i32
    %c0_i32_1 = arith.constant 0 : i32
    return %c0_i32, %c0_i32_0 : i32, i32
  }
  func.func @transform_7(%arg0: i32) -> (i32, i32) {
    %c0_i32 = arith.constant 0 : i32
    %c0_i32_0 = arith.constant 0 : i32
    %c0_i32_1 = arith.constant 0 : i32
    return %c0_i32, %c0_i32_0 : i32, i32
  }
  func.func @transform_8(%arg0: i32) -> (i32, i32) {
    %c0_i32 = arith.constant 0 : i32
    %c0_i32_0 = arith.constant 0 : i32
    %c0_i32_1 = arith.constant 0 : i32
    return %c0_i32, %c0_i32_0 : i32, i32
  }
  func.func @transform_9(%arg0: i32) -> (i32, i32) {
    %c0_i32 = arith.constant 0 : i32
    %c0_i32_0 = arith.constant 0 : i32
    %c0_i32_1 = arith.constant 0 : i32
    return %c0_i32, %c0_i32_0 : i32, i32
  }
  func.func @transform_10(%arg0: i32) -> (i32, i32) {
    %c0_i32 = arith.constant 0 : i32
    %c0_i32_0 = arith.constant 0 : i32
    %c0_i32_1 = arith.constant 0 : i32
    return %c0_i32, %c0_i32_0 : i32, i32
  }
  func.func @transform_11(%arg0: i32) -> (i32, i32) {
    %c0_i32 = arith.constant 0 : i32
    %c0_i32_0 = arith.constant 0 : i32
    return %c0_i32, %arg0 : i32, i32
  }
}

</mosaic_0001>

<bundles_post_ra>
// kernel: tpu_custom_call.1
= control target key start
LH: loop header
LB: loop body
LE: loop exit
PB: predicated region body
PF: predicated region fallthrough
CT: control target
= control target key end

     0   :  { %v429_v3 = vmov 0   ;;  %vm101_vm0 = vcmask 130048   ;;  %s610_s0 = inlined_call_operand.vmem [shape: f32[16,128], index: 0, kind: input, shape index: {}]   ;;  %s611_s1 = inlined_call_operand.vmem [shape: f32[16,128], index: 1, kind: input, shape index: {}]   ;;  %s612_s2 = inlined_call_operand.vmem [shape: f32[64,16], index: 2, kind: input, shape index: {}]   ;;  %s613_s3 = inlined_call_operand.vmem [shape: f32[64,1], index: 3, kind: input, shape index: {}]   ;;  %s614_s4 = inlined_call_operand.vmem [shape: f32[32,64], index: 4, kind: input, shape index: {}]   ;;  %s615_s5 = inlined_call_operand.vmem [shape: f32[32,1], index: 5, kind: input, shape index: {}]   ;;  %s616_s6 = inlined_call_operand.vmem [shape: f32[16,32], index: 6, kind: input, shape index: {}]   ;;  %s617_s7 = inlined_call_operand.vmem [shape: f32[16,1], index: 7, kind: input, shape index: {}]   ;;  %s618_s8 = inlined_call_operand.vmem [shape: f32[16,1], index: 8, kind: input, shape index: {}]   ;;  %s619_s9 = inlined_call_operand.vmem [shape: f32[8,1], index: 9, kind: input, shape index: {}]   ;;  %s620_s10 = inlined_call_operand.<no memory space> [shape: f32[1,1], index: 10, kind: input, shape index: {}]   ;;  %s621_s11 = inlined_call_operand.hbm [shape: f32[1,128], index: 11, kind: output, shape index: {}]  }
   0x1   :  { %v43_v0 = vld [vmem:[%s611_s1 + $0x8] sm:$0xff]  ;;  %v60_v1 = vld [vmem:[%s613_s3 + $0x38] sm:$0xff]  ;;  %397 = vset.pattern.permute.xlu1 %v429_v3  ;;  %396 = vset.pattern.permute.xlu0 %v429_v3  ;;  %v49_v5 = vld [vmem:[%s612_s2 + $0x20] sm:$0xff] }
   0x2   :  { %v58_v2 = vld [vmem:[%s613_s3 + $0x28] sm:$0xff]  ;;  %384 = vmatpush.msra.mxu3 %v43_v0  ;;  %98 = vperm.xlu0 %396, %v60_v1   ;;  %v45_v6 = vld [vmem:[%s612_s2] sm:$0xff]  ;;  %v56_v7 = vld [vmem:[%s613_s3 + $0x18] sm:$0xff] }
   0x3   :  { %v41_v4 = vld [vmem:[%s610_s0 + $0x8] sm:$0xff]  ;;  %88 = vperm.xlu1 %397, %v58_v2   ;;  %140 = vmatpush.msra.mxu0 %v43_v0  ;;  %v59_v8 = vld [vmem:[%s613_s3 + $0x30] sm:$0xff] }
   0x4   :  { %385 = vmatpush.msra.mxu3 %v41_v4  ;;  %398 = vset.pattern.permute.xlu2 %v429_v3 }
   0x5   :  { %373 = vmatmul.msk.f32.vlgmr.msra.gmra.mxu3 %vm101_vm0, %v49_v5  ;;  %141 = vmatpush.msra.mxu0 %v41_v4 }
   0x6   :  { %369 = vmatmul.msk.f32.vlgmr.msra.gmra.mxu0 %vm101_vm0, %v45_v6  ;;  %78 = vperm.xlu2 %398, %v56_v7  }
   0x7   :  { %17 = vsyncpa [#allocation4], 0  ;;  %v57_v9 = vld [vmem:[%s613_s3 + $0x20] sm:$0xff]  ;;  %v50_v10 = vld [vmem:[%s612_s2 + $0x28] sm:$0xff]  ;;  %vm203_vm1 = vcmask 523264   ;;  %vm263_vm2 = vcmask 261120  }
   0x8   :  { %v46_v11 = vld [vmem:[%s612_s2 + $0x8] sm:$0xff]  ;;  %v55_v12 = vld [vmem:[%s613_s3 + $0x10] sm:$0xff]  ;;  %v53_v14 = vld [vmem:[%s613_s3] sm:$0xff] }
   0x9   :  { %v54_v13 = vld [vmem:[%s613_s3 + $0x8] sm:$0xff]  ;;  %v51_v15 = vld [vmem:[%s612_s2 + $0x30] sm:$0xff]  ;;  %v182_v17 = vld [vmem:[%s615_s5 + $0x18] sm:$0xff] }
   0xa   :  { %93 = vperm.xlu0 %396, %v59_v8   ;;  %v47_v16 = vld [vmem:[%s612_s2 + $0x10] sm:$0xff]  ;;  %v180_v19 = vld [vmem:[%s615_s5 + $0x8] sm:$0xff]  ;;  %v52_v20 = vld [vmem:[%s612_s2 + $0x38] sm:$0xff] }
   0xb   :  { %83 = vperm.xlu1 %397, %v57_v9   ;;  %v181_v18 = vld [vmem:[%s615_s5 + $0x10] sm:$0xff]  ;;  %v48_v21 = vld [vmem:[%s612_s2 + $0x18] sm:$0xff]  ;;  %v179_v22 = vld [vmem:[%s615_s5] sm:$0xff] }
   0xc   :  { %v251_v23 = vld [vmem:[%s617_s7] sm:$0xff]  ;;  %v252_v24 = vld [vmem:[%s617_s7 + $0x8] sm:$0xff]  ;;  %v178_v61 = vld [vmem:[%s614_s4 + $0x18] sm:$0xff] }
   0xd   :  { %374 = vmatmul.msk.f32.gmra.mxu3 %vm101_vm0, %v50_v10  ;;  %v308_v25 = vld [vmem:[%s618_s8] sm:$0xff]  ;;  %v309_v26 = vld [vmem:[%s618_s8 + $0x8] sm:$0xff]  ;;  %v177_v63 = vld [vmem:[%s614_s4 + $0x10] sm:$0xff] }
   0xe   :  { %370 = vmatmul.msk.f32.gmra.mxu0 %vm101_vm0, %v46_v11  ;;  %73 = vperm.xlu2 %398, %v55_v12   ;;  %v295_v27 = vld [vmem:[%s619_s9] sm:$0xff]  ;;  %v176_v62 = vld [vmem:[%s614_s4 + $0x8] sm:$0xff] }
   0xf   :  { %v175_v60 = vld [vmem:[%s614_s4] sm:$0xff] }
  0x12   :  { %68 = vperm.xlu0 %396, %v54_v13  }
  0x13   :  { %63 = vperm.xlu1 %397, %v53_v14  }
  0x15   :  { %375 = vmatmul.msk.f32.gmra.mxu3 %vm101_vm0, %v51_v15 }
  0x16   :  { %371 = vmatmul.msk.f32.gmra.mxu0 %vm101_vm0, %v47_v16  ;;  %200 = vperm.xlu2 %398, %v182_v17   ;;  %v249_v16 = vld [vmem:[%s616_s6] sm:$0xff]  ;;  %v250_v17 = vld [vmem:[%s616_s6 + $0x8] sm:$0xff]  ;;  %s430_s6 = smov [#allocation3]  }
  0x17   :  { %s358_s22 = sshll.u32 %s430_s6, 4  ;;  %s359_s22 = int_to_ptr.vmem [resolvable:$true] %s358_s22 }
  0x1a   :  { %195 = vperm.xlu0 %396, %v181_v18  }
  0x1b   :  { %190 = vperm.xlu1 %397, %v180_v19   ;;  %v40_v19 = vld [vmem:[%s610_s0] sm:$0xff] }
  0x1d   :  { %376 = vmatmul.msk.f32.gmra.mxu3 %vm101_vm0, %v52_v20  ;;  %v42_v20 = vld [vmem:[%s611_s1] sm:$0xff] }
  0x1e   :  { %372 = vmatmul.msk.f32.gmra.mxu0 %vm101_vm0, %v48_v21  ;;  %185 = vperm.xlu2 %398, %v179_v22   ;;  %v44_v21 = vmul.f32 %v42_v20, %v40_v19 }
  0x22   :  { %255 = vperm.xlu0 %396, %v251_v23  }
  0x23   :  { %260 = vperm.xlu1 %397, %v252_v24  }
  0x26   :  { %312 = vperm.xlu2 %398, %v308_v25  }
  0x2a   :  { %317 = vperm.xlu0 %396, %v309_v26  }
  0x2b   :  { %298 = vperm.xlu1 %397, %v295_v27  }
  0x60   :  { %v79_v36 = vpop.permute.xlu2 %78 }
  0x68   :  { %v74_v49 = vpop.permute.xlu2 %73 }
  0x70   :  { %v201_v1 = vpop.permute.xlu2 %200 }
  0x74   :  { %v99_v32 = vpop.permute.xlu0 %98 }
  0x75   :  { %v89_v33 = vpop.permute.xlu1 %88 }
  0x78   :  { %v186_v11 = vpop.permute.xlu2 %185 }
  0x7c   :  { %v94_v37 = vpop.permute.xlu0 %93 }
  0x7d   :  { %v84_v41 = vpop.permute.xlu1 %83 }
  0x83   :  { %v143_v28 = vpop.f32.mrf.mxu0 }
  0x84   :  { %v69_v52 = vpop.permute.xlu0 %68 }
  0x85   :  { %v64_v55 = vpop.permute.xlu1 %63 }
  0x86   :  { %v144_v56 = vadd.f32 %v143_v28, %v64_v55 }
  0x88   :  { %v155_v29 = vpop.f32.mrf.mxu3  ;;  %v167_v59 = vmax.f32 %v144_v56, 0.0 }
  0x89   :  { %v156_v45 = vadd.f32 %v155_v29, %v84_v41 }
  0x8b   :  { %v146_v31 = vpop.f32.mrf.mxu0  ;;  %v171_v50 = vmax.f32 %v156_v45, 0.0 }
  0x8c   :  { %v147_v53 = vadd.f32 %v146_v31, %v69_v52  ;;  %v196_v6 = vpop.permute.xlu0 %195 }
  0x8d   :  { %v191_v7 = vpop.permute.xlu1 %190 }
  0x8e   :  { %v168_v58 = vmax.f32 %v147_v53, 0.0 }
  0x90   :  { %v158_v30 = vpop.f32.mrf.mxu3 }
  0x91   :  { %v159_v42 = vadd.f32 %v158_v30, %v89_v33 }
  0x93   :  { %v149_v35 = vpop.f32.mrf.mxu0  ;;  %v172_v47 = vmax.f32 %v159_v42, 0.0 }
  0x94   :  { %v150_v51 = vadd.f32 %v149_v35, %v74_v49  ;;  %v256_v24 = vpop.permute.xlu0 %255 }
  0x95   :  { %v261_v18 = vpop.permute.xlu1 %260 }
  0x96   :  { %v169_v57 = vmax.f32 %v150_v51, 0.0 }
  0x98   :  { %v161_v34 = vpop.f32.mrf.mxu3 }
  0x99   :  { %v162_v39 = vadd.f32 %v161_v34, %v94_v37  ;;  %v313_v34 = vpop.permute.xlu2 %312 }
  0x9b   :  { %v152_v44 = vpop.f32.mrf.mxu0  ;;  %v173_v46 = vmax.f32 %v162_v39, 0.0 }
  0x9c   :  { %v153_v48 = vadd.f32 %v152_v44, %v79_v36  ;;  %v318_v33 = vpop.permute.xlu0 %317 }
  0x9d   :  { %v299_v22 = vpop.permute.xlu1 %298 }
  0x9e   :  { %v170_v54 = vmax.f32 %v153_v48, 0.0  ;;  %v301_v25 = vmul.f32 %v299_v22, %v44_v21  ;;  %v331_v48 = vstv %s620_s10  ;;  %s360_s10 = sshll.u32 %s621_s11, 4  ;;  %s361_s10 = int_to_ptr.hbm [resolvable:$true] %s360_s10 }
  0xa0   :  { %v164_v38 = vpop.f32.mrf.mxu3  ;;  %v302_v27 = vrot.slane %v301_v25, 4 }
  0xa1   :  { %v165_v40 = vadd.f32 %v164_v38, %v99_v32 }
  0xa2   :  { %v303_v31 = vadd.f32 %v302_v27, %v301_v25 }
  0xa3   :  { %v174_v43 = vmax.f32 %v165_v40, 0.0 }
  0xa4   :  { %v304_v37 = vrot.slane %v303_v31, 2 }
  0xa5   :  { %224 = vmatpush.msra.mxu1 %v174_v43  ;;  %386 = vmatpush.msra.mxu2 %v174_v43 }
  0xa6   :  { %v305_v40 = vadd.f32 %v304_v37, %v303_v31 }
  0xa7   :  { %225 = vmatpush.msra.mxu1 %v173_v46  ;;  %387 = vmatpush.msra.mxu2 %v173_v46 }
  0xa8   :  { %v306_v43 = vrot.slane %v305_v40, 1 }
  0xa9   :  { %226 = vmatpush.msra.mxu1 %v172_v47  ;;  %388 = vmatpush.msra.mxu2 %v172_v47 }
  0xaa   :  { %v307_v46 = vadd.f32 %v306_v43, %v305_v40 }
  0xab   :  { %227 = vmatpush.msra.mxu1 %v171_v50  ;;  %389 = vmatpush.msra.mxu2 %v171_v50 }
  0xad   :  { %228 = vmatpush.msra.mxu1 %v170_v54  ;;  %390 = vmatpush.msra.mxu2 %v170_v54 }
  0xaf   :  { %229 = vmatpush.msra.mxu1 %v169_v57  ;;  %391 = vmatpush.msra.mxu2 %v169_v57 }
  0xb1   :  { %230 = vmatpush.msra.mxu1 %v168_v58  ;;  %392 = vmatpush.msra.mxu2 %v168_v58 }
  0xb3   :  { %231 = vmatpush.msra.mxu1 %v167_v59  ;;  %393 = vmatpush.msra.mxu2 %v167_v59 }
  0xb4   :  { %377 = vmatmul.msk.f32.vlgmr.msra.gmra.mxu1 %vm203_vm1, %v175_v60  ;;  %380 = vmatmul.msk.f32.vlgmr.msra.gmra.mxu2 %vm203_vm1, %v178_v61 }
  0xbc   :  { %378 = vmatmul.msk.f32.gmra.mxu1 %vm203_vm1, %v176_v62 }
  0xc4   :  { %379 = vmatmul.msk.f32.gmra.mxu1 %vm203_vm1, %v177_v63 }
 0x131   :  { %v233_v0 = vpop.f32.mrf.mxu1 }
 0x132   :  { %v234_v12 = vadd.f32 %v233_v0, %v186_v11 }
 0x134   :  { %v245_v15 = vmax.f32 %v234_v12, 0.0 }
 0x137   :  { %v242_v2 = vpop.f32.mrf.mxu2 }
 0x138   :  { %v243_v3 = vadd.f32 %v242_v2, %v201_v1 }
 0x139   :  { %v236_v4 = vpop.f32.mrf.mxu1 }
 0x13a   :  { %v248_v5 = vmax.f32 %v243_v3, 0.0  ;;  %v237_v9 = vadd.f32 %v236_v4, %v191_v7 }
 0x13c   :  { %282 = vmatpush.msrb.mxu2 %v248_v5  ;;  %v246_v14 = vmax.f32 %v237_v9, 0.0 }
 0x141   :  { %v239_v8 = vpop.f32.mrf.mxu1 }
 0x142   :  { %v240_v10 = vadd.f32 %v239_v8, %v196_v6 }
 0x144   :  { %v247_v13 = vmax.f32 %v240_v10, 0.0 }
 0x146   :  { %283 = vmatpush.msrb.mxu2 %v247_v13 }
 0x148   :  { %284 = vmatpush.msrb.mxu2 %v246_v14 }
 0x14a   :  { %285 = vmatpush.msrb.mxu2 %v245_v15 }
 0x14b   :  { %381 = vmatmul.msk.f32.vlgmr.msrb.gmra.mxu2 %vm263_vm2, %v249_v16 }
 0x153   :  { %382 = vmatmul.msk.f32.gmra.mxu2 %vm263_vm2, %v250_v17 }
 0x1ce   :  { %v287_v23 = vpop.f32.mrf.mxu2 }
 0x1cf   :  { %v288_v26 = vadd.f32 %v287_v23, %v256_v24 }
 0x1d1   :  { %v293_v29 = vmax.f32 %v288_v26, 0.0 }
 0x1d3   :  { %v320_v35 = vmul.f32 %v313_v34, %v293_v29 }
 0x1d6   :  { %v290_v28 = vpop.f32.mrf.mxu2 }
 0x1d7   :  { %v291_v30 = vadd.f32 %v290_v28, %v261_v18 }
 0x1d9   :  { %v294_v32 = vmax.f32 %v291_v30, 0.0 }
 0x1db   :  { %v321_v36 = vmul.f32 %v318_v33, %v294_v32 }
 0x1dd   :  { %v322_v38 = vadd.f32 %v321_v36, %v320_v35 }
 0x1df   :  { %v323_v39 = vrot.slane %v322_v38, 4 }
 0x1e1   :  { %v324_v41 = vadd.f32 %v323_v39, %v322_v38 }
 0x1e3   :  { %v325_v42 = vrot.slane %v324_v41, 2 }
 0x1e5   :  { %v326_v44 = vadd.f32 %v325_v42, %v324_v41 }
 0x1e7   :  { %v327_v45 = vrot.slane %v326_v44, 1 }
 0x1e9   :  { %v328_v47 = vadd.f32 %v327_v45, %v326_v44 }
 0x1eb   :  { %v329_v49 = vadd.f32 %v328_v47, %v307_v46 }
 0x1ed   :  { %v332_v50 = vadd.f32 %v331_v48, %v329_v49 }
 0x1ef   :  { %v383_v51 = vmul.f32 -1.442695, %v332_v50 }
 0x1f1   :  { %399 = vpow2.f32 %v383_v51 }
 0x1f7   :  { %v400_v52 = vpop.eup %399 }
 0x1f8   :  { %v336_v53 = vadd.f32 1.0, %v400_v52 }
 0x1fa   :  { %401 = vrcp.f32 %v336_v53  ;;  %v348_v57 = vand.u32 2147483648, %v336_v53  ;;  %v346_v59 = vand.u32 2147483647, %v336_v53  ;;  %vm342_vm4 = vweird.f32 %v336_v53 }
 0x1fc   :  { %v349_v61 = vor.u32 1.1754944e-38, %v348_v57  ;;  %vm347_vm6 = vcmp.eq.f32.partialorder %v346_v59, 8.507059e+37 }
 0x200   :  { %v402_v54 = vpop.eup %401 }
 0x201   :  { %v338_v55 = vmul.f32 %v402_v54, %v336_v53  ;;  %vm343_vm3 = vweird.f32 %v402_v54 }
 0x202   :  { %vm344_vm5 = vmor %vm342_vm4, %vm343_vm3 }
 0x203   :  { %v339_v56 = vsub.f32 1.0, %v338_v55 }
 0x205   :  { %v340_v58 = vmul.f32 %v402_v54, %v339_v56 }
 0x207   :  { %v341_v60 = vadd.f32 %v402_v54, %v340_v58 }
 0x209   :  { %v345_v62 = vsel %vm344_vm5, %v402_v54, %v341_v60 }
 0x20a   :  { %v350_v63 = vsel %vm347_vm6, %v349_v61, %v345_v62 }
 0x20b   :  { %352 = vst [vmem:[#allocation3] sm:$0x1] %v350_v63 }
 0x20c   :  { %363 = dma.vmem_to_hbm [thread:$0]  %s359_s22, 16, %s361_s10, [#allocation4]  }
 0x20d   :  { %427 = dma.done.wait [#allocation4], 16  }
 0x20e   :  { %428 = vsyncadd [#allocation4], 4294967280 }
 0x20f   :  { %368 = vsyncpa [#allocation4], 1 }

</bundles_post_ra>
